<compile_context>
chip_gen: v7x
topology: tpu7x:2x2x1
jax: 0.10.0
libtpu: 0.0.40
codegen_flags: <defaults>
</compile_context>

<pallas_src>
import jax
import jax.numpy as jnp
from jax import lax
from jax.experimental import pallas as pl
from jax.experimental.pallas import tpu as pltpu


def _cdiv(a, b):
    return (a + b - 1) // b


def _round_up(x, m):
    return _cdiv(x, m) * m


def _physical_vmem_bytes():
    """Chip-aware VMEM capacity; conservative (v7x = 64 MiB) fallback."""
    try:
        info = pltpu.get_tpu_info()
        vmem = getattr(info, "vmem_capacity_bytes", None)
        if vmem:
            return int(vmem)
    except Exception:
        pass
    return 64 * 1024 * 1024


def _choose_tiling(B, E, D, in_itemsize):
    """Pick the batch tile TB, block count and a safe vmem limit."""
    phys = _physical_vmem_bytes()
    budget = phys // 3  # working-set budget with headroom for compiler copies

    # Per padded batch row: 2x double-buffered inputs per expert + the live
    # f32 temporaries inside the kernel (x, xn, sum_xn ~ 3 * D * 4 bytes).
    per_row = 2 * E * D * in_itemsize + 3 * D * 4
    if per_row * 8 > budget:
        # TODO(synk): add a D-blocked two-pass variant for extreme E*D.
        raise ValueError(
            f"DiversityLoss2 kernel: E*D too large for VMEM "
            f"(needs {per_row * 8} bytes at TB=8, budget {budget} bytes)."
        )

    tb_cap = max(8, (budget // per_row) // 8 * 8)
    nblk = max(1, _cdiv(B, tb_cap))
    TB = _round_up(_cdiv(B, nblk), 8)      # balance blocks -> minimal padding
    B_pad = nblk * TB

    need = 2 * E * TB * D * in_itemsize + 3 * TB * D * 4 + 4 * nblk * 128
    vmem_limit = int(min(phys * 3 // 4, max(32 * 1024 * 1024, need * 3 // 2)))
    return TB, nblk, B_pad, vmem_limit


def _block_offdiag_sum(block_iter):
    """block_iter yields E (TB, D) f32 blocks (one per expert).

    Returns the (1, 1) sum over the TB rows of all off-diagonal pairwise dot
    products of the L2-normalized rows, using
       sum_{e!=f} xn_e.xn_f = ||sum_e xn_e||^2 - sum_e ||xn_e||^2.
    Padding rows (all zeros) normalize to zero and contribute nothing.
    """
    eps = jnp.float32(1e-12)
    sum_xn = None
    diag = None
    for x in block_iter:                                       # E is small -> unrolled
        sq = jnp.sum(x * x, axis=-1, keepdims=True)            # (TB, 1)
        # F.normalize: x / max(||x||, eps)  ==  x * rsqrt(max(sq, eps^2))
        inv = lax.rsqrt(jnp.maximum(sq, eps * eps))            # (TB, 1) EUP op
        xn = x * inv                                           # (TB, D)
        sum_xn = xn if sum_xn is None else sum_xn + xn
        d = sq * inv * inv                                     # == ||xn||^2 exactly
        diag = d if diag is None else diag + d
    off = jnp.sum(sum_xn * sum_xn, axis=-1, keepdims=True) - diag   # (TB, 1)
    return jnp.sum(off, axis=0, keepdims=True)                      # (1, 1)


def _make_list_kernel(num_experts):
    def kernel(*refs):
        x_refs = refs[:num_experts]
        out_ref = refs[num_experts]
        partial = _block_offdiag_sum(r[...].astype(jnp.float32) for r in x_refs)
        out_ref[...] = jnp.broadcast_to(partial, (1, 128))   # lane-dense store
    return kernel


def _make_packed_kernel(num_experts, d):
    def kernel(x_ref, out_ref):
        partial = _block_offdiag_sum(
            x_ref[:, e * d:(e + 1) * d].astype(jnp.float32)
            for e in range(num_experts)
        )
        out_ref[...] = jnp.broadcast_to(partial, (1, 128))
    return kernel


def _finalize(partials, B, E):
    # mean over all B*E*E entries of the diag-masked gram (zero diag included),
    # then (mean + 1) / 2.  Divide by the ORIGINAL B, not the padded one.
    mean = jnp.sum(partials[:, 0]) / jnp.float32(B * E * E)
    return (mean + 1.0) / 2.0


def diversity_loss2(expert_outputs):
    """expert_outputs: list of E arrays, each (B, D). Returns the scalar loss."""
    E = len(expert_outputs)
    B, D = expert_outputs[0].shape
    dtype = expert_outputs[0].dtype
    itemsize = jnp.dtype(dtype).itemsize

    TB, nblk, B_pad, vmem_limit = _choose_tiling(B, E, D, itemsize)

    xs = [jnp.asarray(x, dtype) for x in expert_outputs]
    if B_pad != B:
        # Zero rows normalize to zero and contribute nothing -> padding exact.
        xs = [jnp.pad(x, ((0, B_pad - B), (0, 0))) for x in xs]

    cost = pl.CostEstimate(
        flops=B_pad * D * (5 * E + 2),
        transcendentals=B_pad * E,                       # one rsqrt per row/expert
        bytes_accessed=E * B_pad * D * itemsize + nblk * 128 * 4,
    )

    partials = pl.pallas_call(
        _make_list_kernel(E),
        out_shape=jax.ShapeDtypeStruct((nblk, 128), jnp.float32),
        grid_spec=pltpu.PrefetchScalarGridSpec(
            num_scalar_prefetch=0,
            grid=(nblk,),
            in_specs=[pl.BlockSpec((TB, D), lambda b: (b, 0)) for _ in range(E)],
            out_specs=pl.BlockSpec((1, 128), lambda b: (b, 0)),
        ),
        compiler_params=pltpu.CompilerParams(
            dimension_semantics=("parallel",),
            vmem_limit_bytes=vmem_limit,
        ),
        cost_estimate=cost,
    )(*xs)

    return _finalize(partials, B, E)


def diversity_loss2_packed(packed, num_experts):
    """packed: a single (B, E*D) array with the E experts laid out contiguously
    along the last axis (producer-side layout).  Same result as the list form,
    but one wide lane-dense DMA stream per grid step."""
    E = num_experts
    B, ED = packed.shape
    assert ED % E == 0, "packed last dim must be num_experts * D"
    D = ED // E
    itemsize = jnp.dtype(packed.dtype).itemsize

    TB, nblk, B_pad, vmem_limit = _choose_tiling(B, E, D, itemsize)

    if B_pad != B:
        packed = jnp.pad(packed, ((0, B_pad - B), (0, 0)))

    cost = pl.CostEstimate(
        flops=B_pad * D * (5 * E + 2),
        transcendentals=B_pad * E,
        bytes_accessed=B_pad * ED * itemsize + nblk * 128 * 4,
    )

    partials = pl.pallas_call(
        _make_packed_kernel(E, D),
        out_shape=jax.ShapeDtypeStruct((nblk, 128), jnp.float32),
        grid_spec=pltpu.PrefetchScalarGridSpec(
            num_scalar_prefetch=0,
            grid=(nblk,),
            in_specs=[pl.BlockSpec((TB, ED), lambda b: (b, 0))],
            out_specs=pl.BlockSpec((1, 128), lambda b: (b, 0)),
        ),
        compiler_params=pltpu.CompilerParams(
            dimension_semantics=("parallel",),
            vmem_limit_bytes=vmem_limit,
        ),
        cost_estimate=cost,
    )(packed)

    return _finalize(partials, B, E)


def _reference(expert_outputs):
    # Direct translation of the PyTorch module (gram-matrix form).
    x = jnp.stack(expert_outputs, axis=1).astype(jnp.float32)          # (B, E, D)
    norm = jnp.sqrt(jnp.sum(x * x, axis=-1, keepdims=True))
    xn = x / jnp.maximum(norm, 1e-12)
    sim = jnp.einsum("bed,bfd->bef", xn, xn)
    E = sim.shape[1]
    mask = jnp.eye(E, dtype=sim.dtype)
    masked = sim * (1.0 - mask)
    return (jnp.mean(masked) + 1.0) / 2.0


if __name__ == "__main__":
    B, E, D = 2, 4, 32  # batch, num_experts, feature dim
    key = jax.random.PRNGKey(0)
    keys = jax.random.split(key, E)
    expert_outputs = [
        jax.random.normal(k, (B, D), dtype=jnp.float32) for k in keys
    ]

    ref = jax.block_until_ready(_reference(expert_outputs))

    # List-of-experts form (matches the PyTorch module's call signature).
    loss = jax.block_until_ready(diversity_loss2(expert_outputs))
    assert jnp.allclose(loss, ref, atol=1e-5, rtol=1e-5), (loss, ref)

    # Packed form (producer already stores experts contiguously).
    packed = jnp.concatenate(expert_outputs, axis=-1)   # test-side packing only
    loss_packed = jax.block_until_ready(diversity_loss2_packed(packed, E))
    assert jnp.allclose(loss_packed, ref, atol=1e-5, rtol=1e-5), (loss_packed, ref)

    print("KERNEL_OK")
</pallas_src>

<mosaic_0001>
module attributes {stable_mosaic.version = 11 : i64} {
  func.func @kernel(%arg0: i32, %arg1: memref<8x32xf32, #tpu.memory_space<vmem>>, %arg2: memref<8x32xf32, #tpu.memory_space<vmem>>, %arg3: memref<8x32xf32, #tpu.memory_space<vmem>>, %arg4: memref<8x32xf32, #tpu.memory_space<vmem>>, %arg5: memref<1x128xf32, #tpu.memory_space<vmem>>) attributes {dimension_semantics = [#tpu.dimension_semantics<parallel>], iteration_bounds = array<i64: 1>, scalar_prefetch = 0 : i64, scratch_operands = 0 : i64, tpu.core_type = #tpu.core_type<tc>, window_params = [{transform_indices = @transform_0, window_bounds = array<i64: 8, 32>}, {transform_indices = @transform_1, window_bounds = array<i64: 8, 32>}, {transform_indices = @transform_2, window_bounds = array<i64: 8, 32>}, {transform_indices = @transform_3, window_bounds = array<i64: 8, 32>}, {transform_indices = @transform_4, window_bounds = array<i64: 1, 128>}]} {
    %c0 = arith.constant 0 : index
    %c0_0 = arith.constant 0 : index
    %0 = vector.load %arg1[%c0, %c0_0] : memref<8x32xf32, #tpu.memory_space<vmem>>, vector<8x32xf32>
    %1 = arith.mulf %0, %0 : vector<8x32xf32>
    %cst = arith.constant dense<0.000000e+00> : vector<8xf32>
    %2 = vector.multi_reduction <add>, %1, %cst [1] : vector<8x32xf32> to vector<8xf32>
    %3 = vector.shape_cast %2 : vector<8xf32> to vector<8x1xf32>
    %cst_1 = arith.constant 9.99999996E-13 : f32
    %cst_2 = arith.constant 9.99999996E-13 : f32
    %4 = arith.mulf %cst_1, %cst_2 : f32
    %5 = vector.broadcast %4 : f32 to vector<8x1xf32>
    %6 = arith.maximumf %3, %5 : vector<8x1xf32>
    %7 = math.rsqrt %6 : vector<8x1xf32>
    %8 = vector.broadcast %7 : vector<8x1xf32> to vector<8x32xf32>
    %9 = arith.mulf %0, %8 : vector<8x32xf32>
    %10 = arith.mulf %3, %7 : vector<8x1xf32>
    %11 = arith.mulf %10, %7 : vector<8x1xf32>
    %c0_3 = arith.constant 0 : index
    %c0_4 = arith.constant 0 : index
    %12 = vector.load %arg2[%c0_3, %c0_4] : memref<8x32xf32, #tpu.memory_space<vmem>>, vector<8x32xf32>
    %13 = arith.mulf %12, %12 : vector<8x32xf32>
    %cst_5 = arith.constant dense<0.000000e+00> : vector<8xf32>
    %14 = vector.multi_reduction <add>, %13, %cst_5 [1] : vector<8x32xf32> to vector<8xf32>
    %15 = vector.shape_cast %14 : vector<8xf32> to vector<8x1xf32>
    %cst_6 = arith.constant 9.99999996E-13 : f32
    %cst_7 = arith.constant 9.99999996E-13 : f32
    %16 = arith.mulf %cst_6, %cst_7 : f32
    %17 = vector.broadcast %16 : f32 to vector<8x1xf32>
    %18 = arith.maximumf %15, %17 : vector<8x1xf32>
    %19 = math.rsqrt %18 : vector<8x1xf32>
    %20 = vector.broadcast %19 : vector<8x1xf32> to vector<8x32xf32>
    %21 = arith.mulf %12, %20 : vector<8x32xf32>
    %22 = arith.addf %9, %21 : vector<8x32xf32>
    %23 = arith.mulf %15, %19 : vector<8x1xf32>
    %24 = arith.mulf %23, %19 : vector<8x1xf32>
    %25 = arith.addf %11, %24 : vector<8x1xf32>
    %c0_8 = arith.constant 0 : index
    %c0_9 = arith.constant 0 : index
    %26 = vector.load %arg3[%c0_8, %c0_9] : memref<8x32xf32, #tpu.memory_space<vmem>>, vector<8x32xf32>
    %27 = arith.mulf %26, %26 : vector<8x32xf32>
    %cst_10 = arith.constant dense<0.000000e+00> : vector<8xf32>
    %28 = vector.multi_reduction <add>, %27, %cst_10 [1] : vector<8x32xf32> to vector<8xf32>
    %29 = vector.shape_cast %28 : vector<8xf32> to vector<8x1xf32>
    %cst_11 = arith.constant 9.99999996E-13 : f32
    %cst_12 = arith.constant 9.99999996E-13 : f32
    %30 = arith.mulf %cst_11, %cst_12 : f32
    %31 = vector.broadcast %30 : f32 to vector<8x1xf32>
    %32 = arith.maximumf %29, %31 : vector<8x1xf32>
    %33 = math.rsqrt %32 : vector<8x1xf32>
    %34 = vector.broadcast %33 : vector<8x1xf32> to vector<8x32xf32>
    %35 = arith.mulf %26, %34 : vector<8x32xf32>
    %36 = arith.addf %22, %35 : vector<8x32xf32>
    %37 = arith.mulf %29, %33 : vector<8x1xf32>
    %38 = arith.mulf %37, %33 : vector<8x1xf32>
    %39 = arith.addf %25, %38 : vector<8x1xf32>
    %c0_13 = arith.constant 0 : index
    %c0_14 = arith.constant 0 : index
    %40 = vector.load %arg4[%c0_13, %c0_14] : memref<8x32xf32, #tpu.memory_space<vmem>>, vector<8x32xf32>
    %41 = arith.mulf %40, %40 : vector<8x32xf32>
    %cst_15 = arith.constant dense<0.000000e+00> : vector<8xf32>
    %42 = vector.multi_reduction <add>, %41, %cst_15 [1] : vector<8x32xf32> to vector<8xf32>
    %43 = vector.shape_cast %42 : vector<8xf32> to vector<8x1xf32>
    %cst_16 = arith.constant 9.99999996E-13 : f32
    %cst_17 = arith.constant 9.99999996E-13 : f32
    %44 = arith.mulf %cst_16, %cst_17 : f32
    %45 = vector.broadcast %44 : f32 to vector<8x1xf32>
    %46 = arith.maximumf %43, %45 : vector<8x1xf32>
    %47 = math.rsqrt %46 : vector<8x1xf32>
    %48 = vector.broadcast %47 : vector<8x1xf32> to vector<8x32xf32>
    %49 = arith.mulf %40, %48 : vector<8x32xf32>
    %50 = arith.addf %36, %49 : vector<8x32xf32>
    %51 = arith.mulf %43, %47 : vector<8x1xf32>
    %52 = arith.mulf %51, %47 : vector<8x1xf32>
    %53 = arith.addf %39, %52 : vector<8x1xf32>
    %54 = arith.mulf %50, %50 : vector<8x32xf32>
    %cst_18 = arith.constant dense<0.000000e+00> : vector<8xf32>
    %55 = vector.multi_reduction <add>, %54, %cst_18 [1] : vector<8x32xf32> to vector<8xf32>
    %56 = vector.shape_cast %55 : vector<8xf32> to vector<8x1xf32>
    %57 = arith.subf %56, %53 : vector<8x1xf32>
    %cst_19 = arith.constant dense<0.000000e+00> : vector<1xf32>
    %58 = vector.multi_reduction <add>, %57, %cst_19 [0] : vector<8x1xf32> to vector<1xf32>
    %59 = vector.shape_cast %58 : vector<1xf32> to vector<1x1xf32>
    %60 = vector.shape_cast %59 : vector<1x1xf32> to vector<1x1xf32>
    %61 = vector.broadcast %60 : vector<1x1xf32> to vector<1x128xf32>
    %c0_20 = arith.constant 0 : index
    %c0_21 = arith.constant 0 : index
    %62 = vector.load %arg5[%c0_20, %c0_21] : memref<1x128xf32, #tpu.memory_space<vmem>>, vector<1x128xf32>
    tpu.vector_store %arg5[%c0_20, %c0_21], %61 {strides = array<i32>} : memref<1x128xf32, #tpu.memory_space<vmem>>, vector<1x128xf32>,
    return
  }
  func.func @transform_0(%arg0: i32) -> (i32, i32) {
    %c0_i32 = arith.constant 0 : i32
    %c0_i32_0 = arith.constant 0 : i32
    return %arg0, %c0_i32 : i32, i32
  }
  func.func @transform_1(%arg0: i32) -> (i32, i32) {
    %c0_i32 = arith.constant 0 : i32
    %c0_i32_0 = arith.constant 0 : i32
    return %arg0, %c0_i32 : i32, i32
  }
  func.func @transform_2(%arg0: i32) -> (i32, i32) {
    %c0_i32 = arith.constant 0 : i32
    %c0_i32_0 = arith.constant 0 : i32
    return %arg0, %c0_i32 : i32, i32
  }
  func.func @transform_3(%arg0: i32) -> (i32, i32) {
    %c0_i32 = arith.constant 0 : i32
    %c0_i32_0 = arith.constant 0 : i32
    return %arg0, %c0_i32 : i32, i32
  }
  func.func @transform_4(%arg0: i32) -> (i32, i32) {
    %c0_i32 = arith.constant 0 : i32
    %c0_i32_0 = arith.constant 0 : i32
    return %arg0, %c0_i32 : i32, i32
  }
}

</mosaic_0001>

<bundles_post_ra>
// kernel: tpu_custom_call.1
= control target key start
LH: loop header
LB: loop body
LE: loop exit
PB: predicated region body
PF: predicated region fallthrough
CT: control target
= control target key end

     0   :  { %9 = vsyncpa [#allocation3], 0  ;;  %s319_s0 = inlined_call_operand.hbm [shape: f32[8,32], index: 0, kind: input, shape index: {}]   ;;  %s320_s1 = inlined_call_operand.hbm [shape: f32[8,32], index: 1, kind: input, shape index: {}]   ;;  %s321_s2 = inlined_call_operand.hbm [shape: f32[8,32], index: 2, kind: input, shape index: {}]   ;;  %s322_s3 = inlined_call_operand.vmem [shape: f32[8,32], index: 3, kind: input, shape index: {}]   ;;  %s323_s4 = inlined_call_operand.hbm [shape: f32[1,128], index: 4, kind: output, shape index: {}]  }
   0x1   :  { %10 = vsyncpa [#allocation6], 0 }
   0x2   :  { %11 = vsyncpa [#allocation4], 0  ;;  %s234_s15 = smov [#allocation5]   ;;  %s235_s17 = smov [#allocation2]  }
   0x3   :  { %s28_s16 = sshll.u32 %s234_s15, 4  ;;  %s18_s18 = sshll.u32 %s235_s17, 4  ;;  %s29_s16 = int_to_ptr.vmem [resolvable:$true] %s28_s16  ;;  %s19_s18 = int_to_ptr.vmem [resolvable:$true] %s18_s18 }
   0x4   :  { %s140_s21 = scalar_lea.hbm %s320_s1, 128 }
   0x5   :  { %p141_p0 = scmp.ne.s32.totalorder %s320_s1, %s140_s21  ;;  %p144_p1 = scmp.lt.u32.totalorder %s140_s21, %s320_s1 }
   0x7   :  { %p146_p2 = pnand %p144_p1, %p141_p0 }
   0x9   :  { %149 = shalt.err (!%p146_p2)
}
   0xa   :  { %s150_s26 = scalar_lea.vmem %s29_s16, 128  ;;  %p155_p4 = scmp.lt.s32.totalorder %s29_s16, %s29_s16 }
   0xb   :  { %p151_p3 = scmp.ne.s32.totalorder %s29_s16, %s150_s26  ;;  %p156_p5 = scmp.lt.s32.totalorder %s150_s26, %s150_s26 }
   0xd   :  { %p157_p6 = por %p156_p5, %p155_p4 }
   0xf   :  { %p158_p7 = pnand %p157_p6, %p151_p3 }
  0x11   :  { %161 = shalt.err (!%p158_p7)
}
  0x12   :  { %31 = dma.hbm_to_vmem [thread:$0]  %s320_s1, 128, %s29_s16, [#allocation6]  }
  0x13   :  { %s162_s5 = scalar_lea.hbm %s319_s0, 128 }
  0x14   :  { %p163_p8 = scmp.ne.s32.totalorder %s319_s0, %s162_s5  ;;  %p166_p9 = scmp.lt.u32.totalorder %s162_s5, %s319_s0 }
  0x16   :  { %p168_p10 = pnand %p166_p9, %p163_p8 }
  0x18   :  { %171 = shalt.err (!%p168_p10)
}
  0x19   :  { %s172_s10 = scalar_lea.vmem %s19_s18, 128  ;;  %p177_p12 = scmp.lt.s32.totalorder %s19_s18, %s19_s18 }
  0x1a   :  { %p173_p11 = scmp.ne.s32.totalorder %s19_s18, %s172_s10  ;;  %p178_p13 = scmp.lt.s32.totalorder %s172_s10, %s172_s10 }
  0x1c   :  { %p179_p0 = por %p178_p13, %p177_p12 }
  0x1e   :  { %p180_p1 = pnand %p179_p0, %p173_p11 }
  0x20   :  { %183 = shalt.err (!%p180_p1)
}
  0x21   :  { %21 = dma.hbm_to_vmem [thread:$0]  %s319_s0, 128, %s19_s18, [#allocation3]  }
  0x22   :  { %s236_s12 = smov [#allocation7]   ;;  %s184_s16 = scalar_lea.hbm %s321_s2, 128 }
  0x23   :  { %s38_s13 = sshll.u32 %s236_s12, 4  ;;  %p185_p2 = scmp.ne.s32.totalorder %s321_s2, %s184_s16  ;;  %s39_s13 = int_to_ptr.vmem [resolvable:$true] %s38_s13 }
  0x24   :  { %p188_p3 = scmp.lt.u32.totalorder %s184_s16, %s321_s2 }
  0x26   :  { %p190_p4 = pnand %p188_p3, %p185_p2 }
  0x28   :  { %193 = shalt.err (!%p190_p4)
}
  0x29   :  { %s194_s22 = scalar_lea.vmem %s39_s13, 128  ;;  %p199_p6 = scmp.lt.s32.totalorder %s39_s13, %s39_s13 }
  0x2a   :  { %p195_p5 = scmp.ne.s32.totalorder %s39_s13, %s194_s22  ;;  %p200_p7 = scmp.lt.s32.totalorder %s194_s22, %s194_s22 }
  0x2c   :  { %p201_p8 = por %p200_p7, %p199_p6 }
  0x2e   :  { %p202_p9 = pnand %p201_p8, %p195_p5 }
  0x30   :  { %205 = shalt.err (!%p202_p9)
}
  0x31   :  { %41 = dma.hbm_to_vmem [thread:$0]  %s321_s2, 128, %s39_s13, [#allocation6]  }
  0x32   :  { %228 = dma.done.wait [#allocation3], 128  }
  0x33   :  { %229 = vsyncadd [#allocation3], 4294967168 }
  0x34   :  { %230 = dma.done.wait [#allocation6], 256  }
  0x35   :  { %231 = vsyncadd [#allocation6], 4294967040  ;;  %vm55_vm0 = vcmask 261120   ;;  %v76_v0 = vld [vmem:[#allocation7] sm:$0xff]  ;;  %v53_v1 = vld [vmem:[#allocation2] sm:$0xff]  ;;  %s237_s2 = smov [#allocation8]  }
  0x36   :  { %v88_v2 = vld [vmem:[%s322_s3] sm:$0xff]  ;;  %v77_v3 = vmul.f32 %v76_v0, %v76_v0  ;;  %v54_v4 = vmul.f32 %v53_v1, %v53_v1  ;;  %v64_v6 = vld [vmem:[#allocation5] sm:$0xff]  ;;  %s118_s3 = sshll.u32 %s237_s2, 4  ;;  %s119_s3 = int_to_ptr.vmem [resolvable:$true] %s118_s3 }
  0x37   :  { %v89_v5 = vmul.f32 %v88_v2, %v88_v2  ;;  %v65_v7 = vmul.f32 %v64_v6, %v64_v6  ;;  %s206_s25 = scalar_lea.vmem %s119_s3, 16  ;;  %s210_s26 = scalar_lea.vmem %s119_s3, 32 }
  0x38   :  { %v78_v8 = vsel %vm55_vm0, %v77_v3, 0.0  ;;  %v56_v9 = vsel %vm55_vm0, %v54_v4, 0.0  ;;  %p207_p10 = scmp.ne.s32.totalorder %s119_s3, %s206_s25  ;;  %p211_p11 = scmp.lt.s32.totalorder %s119_s3, %s119_s3 }
  0x39   :  { %79 = vadd.xlane.f32.xlu1 %v78_v8  ;;  %57 = vadd.xlane.f32.xlu0 %v56_v9  ;;  %v90_v10 = vsel %vm55_vm0, %v89_v5, 0.0  ;;  %v66_v11 = vsel %vm55_vm0, %v65_v7, 0.0  ;;  %p212_p12 = scmp.lt.s32.totalorder %s210_s26, %s206_s25 }
  0x3b   :  { %p213_p13 = por %p212_p12, %p211_p11 }
  0x3d   :  { %91 = vadd.xlane.f32.xlu1 %v90_v10  ;;  %67 = vadd.xlane.f32.xlu0 %v66_v11  ;;  %p214_p0 = pnand %p213_p13, %p207_p10 }
  0xc6   :  { %v80_v12 = vpop.xlane.xlu1 %79  ;;  %v58_v13 = vpop.xlane.xlu0 %57 }
  0xc7   :  { %v81_v14 = vmax.f32 %v80_v12, 1e-24  ;;  %v59_v15 = vmax.f32 %v58_v13, 1e-24 }
  0xc9   :  { %132 = vrsqrt.f32 %v81_v14 }
  0xca   :  { %134 = vrsqrt.f32 %v59_v15  ;;  %v92_v16 = vpop.xlane.xlu1 %91  ;;  %v68_v17 = vpop.xlane.xlu0 %67 }
  0xcb   :  { %v93_v18 = vmax.f32 %v92_v16, 1e-24  ;;  %v69_v19 = vmax.f32 %v68_v17, 1e-24 }
  0xcd   :  { %136 = vrsqrt.f32 %v93_v18 }
  0xce   :  { %138 = vrsqrt.f32 %v69_v19 }
  0xd3   :  { %v133_v20 = vpop.eup %132 }
  0xd4   :  { %v135_v21 = vpop.eup %134  ;;  %v85_v22 = vmul.f32 %v133_v20, %v80_v12  ;;  %v83_v35 = vmul.f32 %v133_v20, %v76_v0 }
  0xd5   :  { %v62_v23 = vmul.f32 %v135_v21, %v58_v13  ;;  %v61_v30 = vmul.f32 %v135_v21, %v53_v1 }
  0xd6   :  { %v86_v24 = vmul.f32 %v133_v20, %v85_v22 }
  0xd7   :  { %v137_v25 = vpop.eup %136  ;;  %v63_v26 = vmul.f32 %v135_v21, %v62_v23 }
  0xd8   :  { %v139_v27 = vpop.eup %138  ;;  %v97_v28 = vmul.f32 %v137_v25, %v92_v16  ;;  %v95_v36 = vmul.f32 %v137_v25, %v88_v2 }
  0xd9   :  { %v73_v29 = vmul.f32 %v139_v27, %v68_v17  ;;  %v71_v31 = vmul.f32 %v139_v27, %v64_v6 }
  0xda   :  { %v98_v32 = vmul.f32 %v137_v25, %v97_v28 }
  0xdb   :  { %v74_v33 = vmul.f32 %v139_v27, %v73_v29  ;;  %v72_v34 = vadd.f32 %v71_v31, %v61_v30 }
  0xdd   :  { %v75_v37 = vadd.f32 %v74_v33, %v63_v26  ;;  %v84_v38 = vadd.f32 %v83_v35, %v72_v34 }
  0xdf   :  { %v96_v39 = vadd.f32 %v95_v36, %v84_v38  ;;  %v87_v40 = vadd.f32 %v86_v24, %v75_v37 }
  0xe1   :  { %v100_v41 = vmul.f32 %v96_v39, %v96_v39  ;;  %v99_v42 = vadd.f32 %v98_v32, %v87_v40 }
  0xe3   :  { %v101_v43 = vsel %vm55_vm0, %v100_v41, 0.0 }
  0xe4   :  { %102 = vadd.xlane.f32.xlu0 %v101_v43 }
 0x171   :  { %v103_v44 = vpop.xlane.xlu0 %102 }
 0x172   :  { %v104_v45 = vsub.f32 %v103_v44, %v99_v42 }
 0x174   :  { %v105_v46 = vrot.slane %v104_v45, 4 }
 0x176   :  { %v106_v47 = vadd.f32 %v105_v46, %v104_v45 }
 0x178   :  { %v107_v48 = vrot.slane %v106_v47, 2 }
 0x17a   :  { %v108_v49 = vadd.f32 %v107_v48, %v106_v47 }
 0x17c   :  { %v109_v50 = vrot.slane %v108_v49, 1 }
 0x17e   :  { %v110_v51 = vadd.f32 %v109_v50, %v108_v49 }
 0x180   :  { %111 = vst [vmem:[#allocation8] sm:$0x1] %v110_v51 }
 0x181   :  { %217 = shalt.err (!%p214_p0)
}
 0x182   :  { %s218_s29 = scalar_lea.hbm %s323_s4, 16 }
 0x183   :  { %p219_p1 = scmp.ne.s32.totalorder %s323_s4, %s218_s29  ;;  %p222_p2 = scmp.lt.u32.totalorder %s218_s29, %s323_s4 }
 0x185   :  { %p224_p3 = pnand %p222_p2, %p219_p1 }
 0x187   :  { %227 = shalt.err (!%p224_p3)
}
 0x188   :  { %121 = dma.vmem_to_hbm [thread:$0]  %s119_s3, 16, %s323_s4, [#allocation4]  }
 0x189   :  { %232 = dma.done.wait [#allocation4], 16  }
 0x18a   :  { %233 = vsyncadd [#allocation4], 4294967280 }
 0x18b   :  { %125 = vsyncpa [#allocation3], 1 }
 0x18c   :  { %126 = vsyncpa [#allocation6], 1 }
 0x18d   :  { %127 = vsyncpa [#allocation4], 1 }

</bundles_post_ra>
